<compile_context>
chip_gen: v7x
topology: tpu7x:2x2x1
jax: 0.10.0
libtpu: 0.0.40
codegen_flags: <defaults>
</compile_context>

<pallas_src>
import jax
import jax.numpy as jnp
import numpy as np
from jax.experimental import pallas as pl
from jax.experimental.pallas import tpu as pltpu


def _round_up(x, m):
    return ((x + m - 1) // m) * m


def _pad2(a, rows, cols, dtype):
    a = a.astype(dtype)
    pr, pc = rows - a.shape[0], cols - a.shape[1]
    if pr == 0 and pc == 0:
        return a
    return jnp.pad(a, ((0, pr), (0, pc)))


# ----------------------------------------------------------------------------
# Pallas kernel: K-tiled mean aggregation for both graphs + fused transform
# ----------------------------------------------------------------------------
def bottleneck_kernel(adjA_ref, xA_ref, adjB_ref, xB_ref,
                      ctx_ref, wn_ref, ws_ref, b_ref,
                      invA_ref, invB_ref, out_ref, acc_ref):
    k = pl.program_id(1)

    @pl.when(k == 0)
    def _init():
        acc_ref[...] = jnp.zeros_like(acc_ref)

    # Neighbor aggregation for this K tile, both graphs. The adjacency holds
    # exact edge counts; the 1/deg mean factor is applied as an f32 row scale
    # so the accumulator keeps full precision across K tiles.
    pA = jnp.dot(adjA_ref[...], xA_ref[...], preferred_element_type=jnp.float32)
    pB = jnp.dot(adjB_ref[...], xB_ref[...], preferred_element_type=jnp.float32)
    acc_ref[...] += invA_ref[...] * pA + invB_ref[...] * pB

    @pl.when(k == pl.num_programs(1) - 1)
    def _finalize():
        # agg is re-quantized to bf16 for the MXU; accumulation stays f32.
        agg = acc_ref[...].astype(wn_ref.dtype)
        out = jnp.dot(agg, wn_ref[...], preferred_element_type=jnp.float32)
        out = out + jnp.dot(ctx_ref[...], ws_ref[...],
                            preferred_element_type=jnp.float32)
        out_ref[...] = (out + b_ref[...]).astype(out_ref.dtype)


def bottleneck_pallas(adjA, invA, xA, adjB, invB, xB, context,
                      w_nbr, w_self, b, *,
                      compute_dtype=jnp.bfloat16, out_dtype=jnp.bfloat16):
    n_ctx = context.shape[0]
    f_in = xA.shape[1]
    f_ctx = context.shape[1]
    f_out = w_nbr.shape[1]
    nA, nB = xA.shape[0], xB.shape[0]
    assert xB.shape[1] == f_in
    assert adjA.shape == (n_ctx, nA) and adjB.shape == (n_ctx, nB)
    assert w_nbr.shape == (f_in, f_out) and w_self.shape == (f_ctx, f_out)
    assert b.shape == (f_out,)

    # ---- lane-dense padding (zero padding is exact under matmul) -----------
    f_in_p = _round_up(f_in, 128)
    f_ctx_p = _round_up(f_ctx, 128)
    f_out_p = _round_up(f_out, 128)

    # Row tile: multiples of 16 (bf16 sublane packing); 256 rows for large
    # context sets (amortizes per-step overhead, fills the MXU M dim and gives
    # many 'parallel' steps so v7x megacore sharding engages), full otherwise.
    m16 = _round_up(n_ctx, 16)
    tm = 256 if m16 > 256 else m16
    m_p = _round_up(n_ctx, tm)
    grid_m = m_p // tm

    # Aggregation contraction tiled as a trailing 'arbitrary' grid axis with
    # an f32 VMEM accumulator; caps per-step VMEM on every generation.
    k_max = max(nA, nB)
    tk = min(512, _round_up(k_max, 128))
    k_p = _round_up(k_max, tk)
    grid_k = k_p // tk

    adjA_p = _pad2(adjA, m_p, k_p, compute_dtype)
    adjB_p = _pad2(adjB, m_p, k_p, compute_dtype)
    xA_p = _pad2(xA, k_p, f_in_p, compute_dtype)
    xB_p = _pad2(xB, k_p, f_in_p, compute_dtype)
    ctx_p = _pad2(context, m_p, f_ctx_p, compute_dtype)
    wn_p = _pad2(w_nbr, f_in_p, f_out_p, compute_dtype)
    # gnn() is applied twice with shared weights -> self/bias terms doubled.
    ws2_p = _pad2(2.0 * w_self, f_ctx_p, f_out_p, compute_dtype)
    b2_p = _pad2((2.0 * b).reshape(1, -1), 1, f_out_p, jnp.float32)
    invA_p = _pad2(invA, m_p, 1, jnp.float32)
    invB_p = _pad2(invB, m_p, 1, jnp.float32)

    out_p = pl.pallas_call(
        bottleneck_kernel,
        out_shape=jax.ShapeDtypeStruct((m_p, f_out_p), out_dtype),
        grid_spec=pltpu.PrefetchScalarGridSpec(
            num_scalar_prefetch=0,
            grid=(grid_m, grid_k),
            in_specs=[
                pl.BlockSpec((tm, tk), lambda i, k: (i, k)),           # adjA
                pl.BlockSpec((tk, f_in_p), lambda i, k: (k, 0)),       # xA
                pl.BlockSpec((tm, tk), lambda i, k: (i, k)),           # adjB
                pl.BlockSpec((tk, f_in_p), lambda i, k: (k, 0)),       # xB
                pl.BlockSpec((tm, f_ctx_p), lambda i, k: (i, 0)),      # context
                pl.BlockSpec((f_in_p, f_out_p), lambda i, k: (0, 0)),  # W_nbr
                pl.BlockSpec((f_ctx_p, f_out_p), lambda i, k: (0, 0)), # 2*W_self
                pl.BlockSpec((1, f_out_p), lambda i, k: (0, 0)),       # 2*b
                pl.BlockSpec((tm, 1), lambda i, k: (i, 0)),            # 1/degA
                pl.BlockSpec((tm, 1), lambda i, k: (i, 0)),            # 1/degB
            ],
            out_specs=pl.BlockSpec((tm, f_out_p), lambda i, k: (i, 0)),
            scratch_shapes=[pltpu.VMEM((tm, f_in_p), jnp.float32)],
        ),
        compiler_params=pltpu.CompilerParams(
            dimension_semantics=("parallel", "arbitrary"),
            vmem_limit_bytes=32 * 1024 * 1024,
        ),
    )(adjA_p, xA_p, adjB_p, xB_p, ctx_p, wn_p, ws2_p, b2_p, invA_p, invB_p)

    # Padded output rows contain 2*b (not zeros); slice them off here.
    return out_p[:n_ctx, :f_out]


# ----------------------------------------------------------------------------
# Glue: edge_index [2, E] -> (edge-count adjacency, per-row 1/deg)
#   edge_index[0] = source index into graph.x
#   edge_index[1] = target index into context
# ----------------------------------------------------------------------------
def edges_to_adj(edge_index, n_ctx, n_x):
    src, tgt = edge_index[0], edge_index[1]
    counts = jnp.zeros((n_ctx, n_x), jnp.float32).at[tgt, src].add(1.0)
    deg = counts.sum(axis=-1, keepdims=True)
    inv_deg = jnp.where(deg > 0.0, 1.0 / deg, 0.0)
    return counts, inv_deg


# Pure-JAX f32 reference for verification.
def bottleneck_ref(adjA, invA, xA, adjB, invB, xB, context, w_nbr, w_self, b):
    gA = (invA * (adjA @ xA)) @ w_nbr + context @ w_self + b
    gB = (invB * (adjB @ xB)) @ w_nbr + context @ w_self + b
    return gA + gB


if __name__ == "__main__":
    key = jax.random.PRNGKey(0)
    ks = iter(jax.random.split(key, 12))

    # Small synthetic sizes (different node counts per graph to exercise padding).
    n_xA, n_xB = 16, 12   # nodes per input graph
    n_ctx = 8             # context nodes
    f_in, f_ctx, f_out = 32, 32, 32
    n_edges = 64          # bipartite edges per graph

    xA = jax.random.normal(next(ks), (n_xA, f_in), jnp.float32)
    xB = jax.random.normal(next(ks), (n_xB, f_in), jnp.float32)
    context = jax.random.normal(next(ks), (n_ctx, f_ctx), jnp.float32)

    # Bipartite edge indices (graph node -> context node).
    edgesA = jnp.stack([
        jax.random.randint(next(ks), (n_edges,), 0, n_xA),
        jax.random.randint(next(ks), (n_edges,), 0, n_ctx),
    ])
    edgesB = jnp.stack([
        jax.random.randint(next(ks), (n_edges,), 0, n_xB),
        jax.random.randint(next(ks), (n_edges,), 0, n_ctx),
    ])

    # Deterministic GNN parameters (shared across both gnn() calls).
    w_nbr = jax.random.normal(next(ks), (f_in, f_out), jnp.float32) * 0.1
    w_self = jax.random.normal(next(ks), (f_ctx, f_out), jnp.float32) * 0.1
    bias = jax.random.normal(next(ks), (f_out,), jnp.float32) * 0.1

    adjA, invA = edges_to_adj(edgesA, n_ctx, n_xA)
    adjB, invB = edges_to_adj(edgesB, n_ctx, n_xB)

    out = bottleneck_pallas(adjA, invA, xA, adjB, invB, xB, context,
                            w_nbr, w_self, bias)
    out = jax.block_until_ready(out)

    ref = bottleneck_ref(adjA, invA, xA, adjB, invB, xB, context,
                         w_nbr, w_self, bias)
    # MXU operands are bf16 (f32 accumulate) and the output is bf16;
    # tolerance sized for bf16.
    np.testing.assert_allclose(np.asarray(out, dtype=np.float32),
                               np.asarray(ref), rtol=3e-2, atol=3e-2)

    print("KERNEL_OK")
</pallas_src>

<mosaic_0001>
module attributes {stable_mosaic.version = 11 : i64} {
  func.func @bottleneck_kernel(%arg0: i32, %arg1: i32, %arg2: memref<16x128xbf16, #tpu.memory_space<vmem>>, %arg3: memref<128x128xbf16, #tpu.memory_space<vmem>>, %arg4: memref<16x128xbf16, #tpu.memory_space<vmem>>, %arg5: memref<128x128xbf16, #tpu.memory_space<vmem>>, %arg6: memref<16x128xbf16, #tpu.memory_space<vmem>>, %arg7: memref<128x128xbf16, #tpu.memory_space<vmem>>, %arg8: memref<128x128xbf16, #tpu.memory_space<vmem>>, %arg9: memref<1x128xf32, #tpu.memory_space<vmem>>, %arg10: memref<16x1xf32, #tpu.memory_space<vmem>>, %arg11: memref<16x1xf32, #tpu.memory_space<vmem>>, %arg12: memref<16x128xbf16, #tpu.memory_space<vmem>>, %arg13: memref<16x128xf32, #tpu.memory_space<vmem>>) attributes {dimension_semantics = [#tpu.dimension_semantics<parallel>, #tpu.dimension_semantics<arbitrary>], iteration_bounds = array<i64: 1, 1>, scalar_prefetch = 0 : i64, scratch_operands = 1 : i64, tpu.core_type = #tpu.core_type<tc>, window_params = [{transform_indices = @transform_0, window_bounds = array<i64: 16, 128>}, {transform_indices = @transform_1, window_bounds = array<i64: 128, 128>}, {transform_indices = @transform_2, window_bounds = array<i64: 16, 128>}, {transform_indices = @transform_3, window_bounds = array<i64: 128, 128>}, {transform_indices = @transform_4, window_bounds = array<i64: 16, 128>}, {pipeline_mode = #tpu.pipeline_mode<synchronous>, transform_indices = @transform_5, window_bounds = array<i64: 128, 128>}, {pipeline_mode = #tpu.pipeline_mode<synchronous>, transform_indices = @transform_6, window_bounds = array<i64: 128, 128>}, {pipeline_mode = #tpu.pipeline_mode<synchronous>, transform_indices = @transform_7, window_bounds = array<i64: 1, 128>}, {transform_indices = @transform_8, window_bounds = array<i64: 16, 1>}, {transform_indices = @transform_9, window_bounds = array<i64: 16, 1>}, {transform_indices = @transform_10, window_bounds = array<i64: 16, 128>}]} {
    %c0_i32 = arith.constant 0 : i32
    %0 = arith.cmpi eq, %arg1, %c0_i32 : i32
    %1 = arith.extui %0 : i1 to i32
    %c0_i32_0 = arith.constant 0 : i32
    %2 = arith.cmpi ne, %1, %c0_i32_0 : i32
    scf.if %2 {
      %cst_19 = arith.constant 0.000000e+00 : f32
      %22 = vector.broadcast %cst_19 : f32 to vector<16x128xf32>
      %c0_20 = arith.constant 0 : index
      %c0_21 = arith.constant 0 : index
      %23 = vector.load %arg13[%c0_20, %c0_21] : memref<16x128xf32, #tpu.memory_space<vmem>>, vector<16x128xf32>
      tpu.vector_store %arg13[%c0_20, %c0_21], %22 {strides = array<i32>} : memref<16x128xf32, #tpu.memory_space<vmem>>, vector<16x128xf32>,
    } else {
    }
    %c0 = arith.constant 0 : index
    %c0_1 = arith.constant 0 : index
    %3 = vector.load %arg2[%c0, %c0_1] : memref<16x128xbf16, #tpu.memory_space<vmem>>, vector<16x128xbf16>
    %c0_2 = arith.constant 0 : index
    %c0_3 = arith.constant 0 : index
    %4 = vector.load %arg3[%c0_2, %c0_3] : memref<128x128xbf16, #tpu.memory_space<vmem>>, vector<128x128xbf16>
    %cst = arith.constant dense<0.000000e+00> : vector<16x128xf32>
    %5 = tpu.matmul %3, %4, %cst {dimension_numbers = #tpu.dot_dimension_numbers<[1], [0], [0], [1], [0, 0, 1, 1], [], []>} : vector<16x128xbf16>, vector<128x128xbf16>, vector<16x128xf32> -> vector<16x128xf32>
    %c0_4 = arith.constant 0 : index
    %c0_5 = arith.constant 0 : index
    %6 = vector.load %arg4[%c0_4, %c0_5] : memref<16x128xbf16, #tpu.memory_space<vmem>>, vector<16x128xbf16>
    %c0_6 = arith.constant 0 : index
    %c0_7 = arith.constant 0 : index
    %7 = vector.load %arg5[%c0_6, %c0_7] : memref<128x128xbf16, #tpu.memory_space<vmem>>, vector<128x128xbf16>
    %cst_8 = arith.constant dense<0.000000e+00> : vector<16x128xf32>
    %8 = tpu.matmul %6, %7, %cst_8 {dimension_numbers = #tpu.dot_dimension_numbers<[1], [0], [0], [1], [0, 0, 1, 1], [], []>} : vector<16x128xbf16>, vector<128x128xbf16>, vector<16x128xf32> -> vector<16x128xf32>
    %c0_9 = arith.constant 0 : index
    %c0_10 = arith.constant 0 : index
    %9 = vector.load %arg13[%c0_9, %c0_10] : memref<16x128xf32, #tpu.memory_space<vmem>>, vector<16x128xf32>
    %c0_11 = arith.constant 0 : index
    %c0_12 = arith.constant 0 : index
    %10 = vector.load %arg10[%c0_11, %c0_12] : memref<16x1xf32, #tpu.memory_space<vmem>>, vector<16x1xf32>
    %11 = vector.broadcast %10 : vector<16x1xf32> to vector<16x128xf32>
    %12 = arith.mulf %11, %5 : vector<16x128xf32>
    %c0_13 = arith.constant 0 : index
    %c0_14 = arith.constant 0 : index
    %13 = vector.load %arg11[%c0_13, %c0_14] : memref<16x1xf32, #tpu.memory_space<vmem>>, vector<16x1xf32>
    %14 = vector.broadcast %13 : vector<16x1xf32> to vector<16x128xf32>
    %15 = arith.mulf %14, %8 : vector<16x128xf32>
    %16 = arith.addf %12, %15 : vector<16x128xf32>
    %17 = arith.addf %9, %16 : vector<16x128xf32>
    %c0_15 = arith.constant 0 : index
    %c0_16 = arith.constant 0 : index
    %18 = vector.load %arg13[%c0_15, %c0_16] : memref<16x128xf32, #tpu.memory_space<vmem>>, vector<16x128xf32>
    tpu.vector_store %arg13[%c0_15, %c0_16], %17 {strides = array<i32>} : memref<16x128xf32, #tpu.memory_space<vmem>>, vector<16x128xf32>,
    %c0_i32_17 = arith.constant 0 : i32
    %19 = arith.cmpi eq, %arg1, %c0_i32_17 : i32
    %20 = arith.extui %19 : i1 to i32
    %c0_i32_18 = arith.constant 0 : i32
    %21 = arith.cmpi ne, %20, %c0_i32_18 : i32
    scf.if %21 {
      %c0_19 = arith.constant 0 : index
      %c0_20 = arith.constant 0 : index
      %22 = vector.load %arg13[%c0_19, %c0_20] : memref<16x128xf32, #tpu.memory_space<vmem>>, vector<16x128xf32>
      %23 = arith.truncf %22 : vector<16x128xf32> to vector<16x128xbf16>
      %c0_21 = arith.constant 0 : index
      %c0_22 = arith.constant 0 : index
      %24 = vector.load %arg7[%c0_21, %c0_22] : memref<128x128xbf16, #tpu.memory_space<vmem>>, vector<128x128xbf16>
      %cst_23 = arith.constant dense<0.000000e+00> : vector<16x128xf32>
      %25 = tpu.matmul %23, %24, %cst_23 {dimension_numbers = #tpu.dot_dimension_numbers<[1], [0], [0], [1], [0, 0, 1, 1], [], []>} : vector<16x128xbf16>, vector<128x128xbf16>, vector<16x128xf32> -> vector<16x128xf32>
      %c0_24 = arith.constant 0 : index
      %c0_25 = arith.constant 0 : index
      %26 = vector.load %arg6[%c0_24, %c0_25] : memref<16x128xbf16, #tpu.memory_space<vmem>>, vector<16x128xbf16>
      %c0_26 = arith.constant 0 : index
      %c0_27 = arith.constant 0 : index
      %27 = vector.load %arg8[%c0_26, %c0_27] : memref<128x128xbf16, #tpu.memory_space<vmem>>, vector<128x128xbf16>
      %cst_28 = arith.constant dense<0.000000e+00> : vector<16x128xf32>
      %28 = tpu.matmul %26, %27, %cst_28 {dimension_numbers = #tpu.dot_dimension_numbers<[1], [0], [0], [1], [0, 0, 1, 1], [], []>} : vector<16x128xbf16>, vector<128x128xbf16>, vector<16x128xf32> -> vector<16x128xf32>
      %29 = arith.addf %25, %28 : vector<16x128xf32>
      %c0_29 = arith.constant 0 : index
      %c0_30 = arith.constant 0 : index
      %30 = vector.load %arg9[%c0_29, %c0_30] : memref<1x128xf32, #tpu.memory_space<vmem>>, vector<1x128xf32>
      %31 = vector.broadcast %30 : vector<1x128xf32> to vector<16x128xf32>
      %32 = arith.addf %29, %31 : vector<16x128xf32>
      %33 = arith.truncf %32 : vector<16x128xf32> to vector<16x128xbf16>
      %c0_31 = arith.constant 0 : index
      %c0_32 = arith.constant 0 : index
      %34 = vector.load %arg12[%c0_31, %c0_32] : memref<16x128xbf16, #tpu.memory_space<vmem>>, vector<16x128xbf16>
      tpu.vector_store %arg12[%c0_31, %c0_32], %33 {strides = array<i32>} : memref<16x128xbf16, #tpu.memory_space<vmem>>, vector<16x128xbf16>,
    } else {
    }
    return
  }
  func.func @transform_0(%arg0: i32, %arg1: i32) -> (i32, i32) {
    %c0_i32 = arith.constant 0 : i32
    return %arg0, %arg1 : i32, i32
  }
  func.func @transform_1(%arg0: i32, %arg1: i32) -> (i32, i32) {
    %c0_i32 = arith.constant 0 : i32
    %c0_i32_0 = arith.constant 0 : i32
    return %arg1, %c0_i32 : i32, i32
  }
  func.func @transform_2(%arg0: i32, %arg1: i32) -> (i32, i32) {
    %c0_i32 = arith.constant 0 : i32
    return %arg0, %arg1 : i32, i32
  }
  func.func @transform_3(%arg0: i32, %arg1: i32) -> (i32, i32) {
    %c0_i32 = arith.constant 0 : i32
    %c0_i32_0 = arith.constant 0 : i32
    return %arg1, %c0_i32 : i32, i32
  }
  func.func @transform_4(%arg0: i32, %arg1: i32) -> (i32, i32) {
    %c0_i32 = arith.constant 0 : i32
    %c0_i32_0 = arith.constant 0 : i32
    return %arg0, %c0_i32 : i32, i32
  }
  func.func @transform_5(%arg0: i32, %arg1: i32) -> (i32, i32) {
    %c0_i32 = arith.constant 0 : i32
    %c0_i32_0 = arith.constant 0 : i32
    %c0_i32_1 = arith.constant 0 : i32
    return %c0_i32, %c0_i32_0 : i32, i32
  }
  func.func @transform_6(%arg0: i32, %arg1: i32) -> (i32, i32) {
    %c0_i32 = arith.constant 0 : i32
    %c0_i32_0 = arith.constant 0 : i32
    %c0_i32_1 = arith.constant 0 : i32
    return %c0_i32, %c0_i32_0 : i32, i32
  }
  func.func @transform_7(%arg0: i32, %arg1: i32) -> (i32, i32) {
    %c0_i32 = arith.constant 0 : i32
    %c0_i32_0 = arith.constant 0 : i32
    %c0_i32_1 = arith.constant 0 : i32
    return %c0_i32, %c0_i32_0 : i32, i32
  }
  func.func @transform_8(%arg0: i32, %arg1: i32) -> (i32, i32) {
    %c0_i32 = arith.constant 0 : i32
    %c0_i32_0 = arith.constant 0 : i32
    return %arg0, %c0_i32 : i32, i32
  }
  func.func @transform_9(%arg0: i32, %arg1: i32) -> (i32, i32) {
    %c0_i32 = arith.constant 0 : i32
    %c0_i32_0 = arith.constant 0 : i32
    return %arg0, %c0_i32 : i32, i32
  }
  func.func @transform_10(%arg0: i32, %arg1: i32) -> (i32, i32) {
    %c0_i32 = arith.constant 0 : i32
    %c0_i32_0 = arith.constant 0 : i32
    return %arg0, %c0_i32 : i32, i32
  }
}

</mosaic_0001>

<bundles_post_ra>
// kernel: tpu_custom_call.1
= control target key start
LH: loop header
LB: loop body
LE: loop exit
PB: predicated region body
PF: predicated region fallthrough
CT: control target
= control target key end

     0   :  { %15 = vsyncpa [#allocation4], 0  ;;  %s1166_s0 = inlined_call_operand.vmem [shape: bf16[16,128], index: 0, kind: input, shape index: {}]   ;;  %s1167_s1 = inlined_call_operand.hbm [shape: bf16[128,128], index: 1, kind: input, shape index: {}]   ;;  %s1168_s2 = inlined_call_operand.vmem [shape: bf16[16,128], index: 2, kind: input, shape index: {}]   ;;  %s1169_s3 = inlined_call_operand.hbm [shape: bf16[128,128], index: 3, kind: input, shape index: {}]   ;;  %s1170_s4 = inlined_call_operand.vmem [shape: bf16[16,128], index: 4, kind: input, shape index: {}]   ;;  %s1171_s5 = inlined_call_operand.hbm [shape: bf16[128,128], index: 5, kind: input, shape index: {}]   ;;  %s1172_s6 = inlined_call_operand.hbm [shape: bf16[128,128], index: 6, kind: input, shape index: {}]   ;;  %s1173_s7 = inlined_call_operand.vmem [shape: f32[1,128], index: 7, kind: input, shape index: {}]   ;;  %s1174_s8 = inlined_call_operand.vmem [shape: f32[16,1], index: 8, kind: input, shape index: {}]   ;;  %s1175_s9 = inlined_call_operand.vmem [shape: f32[16,1], index: 9, kind: input, shape index: {}]   ;;  %s1176_s10 = inlined_call_operand.hbm [shape: bf16[16,128], index: 10, kind: output, shape index: {}]  }
   0x1   :  { %16 = vsyncpa [#allocation7], 0 }
   0x2   :  { %17 = vsyncpa [#allocation10], 0 }
   0x3   :  { %18 = vsyncpa [#allocation5], 0  ;;  %s948_s13 = smov [#allocation6]   ;;  %s949_s15 = smov [#allocation3]  }
   0x4   :  { %s40_s14 = sshll.u32 %s948_s13, 4  ;;  %s26_s16 = sshll.u32 %s949_s15, 4  ;;  %s41_s14 = int_to_ptr.vmem [resolvable:$true] %s40_s14  ;;  %s1013_s16 = int_to_ptr.vmem [resolvable:$true] %s26_s16 }
   0x5   :  { %s830_s19 = scalar_lea.hbm %s1169_s3, 1024 }
   0x6   :  { %p831_p0 = scmp.ne.s32.totalorder %s1169_s3, %s830_s19  ;;  %p834_p1 = scmp.lt.u32.totalorder %s830_s19, %s1169_s3 }
   0x8   :  { %p836_p2 = pnand %p834_p1, %p831_p0 }
   0xa   :  { %839 = shalt.err (!%p836_p2)
}
   0xb   :  { %s840_s24 = scalar_lea.vmem %s41_s14, 1024  ;;  %p845_p4 = scmp.lt.s32.totalorder %s41_s14, %s41_s14 }
   0xc   :  { %p841_p3 = scmp.ne.s32.totalorder %s41_s14, %s840_s24  ;;  %p846_p5 = scmp.lt.s32.totalorder %s840_s24, %s840_s24 }
   0xe   :  { %p847_p6 = por %p846_p5, %p845_p4 }
  0x10   :  { %p848_p7 = pnand %p847_p6, %p841_p3 }
  0x12   :  { %851 = shalt.err (!%p848_p7)
}
  0x13   :  { %s950_s25 = smov 64   ;;  %s951_s26 = smov 4  }
  0x14   :  { %46 = dma.hbm_to_vmem [thread:$0]  %s1169_s3, 1024, %s41_s14, [#allocation7], %s950_s25, %s950_s25, %s951_s26  }
  0x15   :  { %s852_s11 = scalar_lea.hbm %s1167_s1, 1024 }
  0x16   :  { %p853_p8 = scmp.ne.s32.totalorder %s1167_s1, %s852_s11  ;;  %p856_p9 = scmp.lt.u32.totalorder %s852_s11, %s1167_s1 }
  0x18   :  { %p858_p10 = pnand %p856_p9, %p853_p8 }
  0x1a   :  { %861 = shalt.err (!%p858_p10)
}
  0x1b   :  { %s862_s18 = scalar_lea.vmem %s1013_s16, 1024  ;;  %p867_p12 = scmp.lt.s32.totalorder %s1013_s16, %s1013_s16 }
  0x1c   :  { %p863_p11 = scmp.ne.s32.totalorder %s1013_s16, %s862_s18  ;;  %p868_p13 = scmp.lt.s32.totalorder %s862_s18, %s862_s18 }
  0x1e   :  { %p869_p0 = por %p868_p13, %p867_p12 }
  0x20   :  { %p870_p1 = pnand %p869_p0, %p863_p11 }
  0x22   :  { %873 = shalt.err (!%p870_p1)
}
  0x23   :  { %32 = dma.hbm_to_vmem [thread:$0]  %s1167_s1, 1024, %s1013_s16, [#allocation4], %s950_s25, %s950_s25, %s951_s26  }
  0x24   :  { %s952_s19 = smov [#allocation8]   ;;  %s953_s21 = smov [#allocation9]  }
  0x25   :  { %s54_s20 = sshll.u32 %s952_s19, 4  ;;  %s66_s22 = sshll.u32 %s953_s21, 4  ;;  %s55_s20 = int_to_ptr.vmem [resolvable:$true] %s54_s20  ;;  %s1050_s22 = int_to_ptr.vmem [resolvable:$true] %s66_s22 }
  0x26   :  { %s874_s27 = scalar_lea.hbm %s1171_s5, 1024 }
  0x27   :  { %p875_p2 = scmp.ne.s32.totalorder %s1171_s5, %s874_s27  ;;  %p878_p3 = scmp.lt.u32.totalorder %s874_s27, %s1171_s5 }
  0x29   :  { %p880_p4 = pnand %p878_p3, %p875_p2 }
  0x2b   :  { %883 = shalt.err (!%p880_p4)
}
  0x2c   :  { %s884_s1 = scalar_lea.vmem %s55_s20, 1024  ;;  %p889_p6 = scmp.lt.s32.totalorder %s55_s20, %s55_s20 }
  0x2d   :  { %p885_p5 = scmp.ne.s32.totalorder %s55_s20, %s884_s1  ;;  %p890_p7 = scmp.lt.s32.totalorder %s884_s1, %s884_s1 }
  0x2f   :  { %p891_p8 = por %p890_p7, %p889_p6 }
  0x31   :  { %p892_p9 = pnand %p891_p8, %p885_p5 }
  0x33   :  { %895 = shalt.err (!%p892_p9)
}
  0x34   :  { %60 = dma.hbm_to_vmem [thread:$0]  %s1171_s5, 1024, %s55_s20, [#allocation7], %s950_s25, %s950_s25, %s951_s26  }
  0x35   :  { %s896_s17 = scalar_lea.hbm %s1172_s6, 1024 }
  0x36   :  { %p897_p10 = scmp.ne.s32.totalorder %s1172_s6, %s896_s17  ;;  %p900_p11 = scmp.lt.u32.totalorder %s896_s17, %s1172_s6 }
  0x38   :  { %p902_p12 = pnand %p900_p11, %p897_p10 }
  0x3a   :  { %905 = shalt.err (!%p902_p12)
}
  0x3b   :  { %s906_s21 = scalar_lea.vmem %s1050_s22, 1024  ;;  %p911_p0 = scmp.lt.s32.totalorder %s1050_s22, %s1050_s22 }
  0x3c   :  { %p907_p13 = scmp.ne.s32.totalorder %s1050_s22, %s906_s21  ;;  %p912_p1 = scmp.lt.s32.totalorder %s906_s21, %s906_s21 }
  0x3e   :  { %p913_p2 = por %p912_p1, %p911_p0 }
  0x40   :  { %p914_p3 = pnand %p913_p2, %p907_p13 }
  0x42   :  { %917 = shalt.err (!%p914_p3)
}
  0x43   :  { %72 = dma.hbm_to_vmem [thread:$0]  %s1172_s6, 1024, %s1050_s22, [#allocation10], %s950_s25, %s950_s25, %s951_s26  }
  0x44   :  { %940 = dma.done.wait [#allocation4], 1024  }
  0x45   :  { %941 = vsyncadd [#allocation4], 4294966272 }
  0x46   :  { %942 = dma.done.wait [#allocation7], 2048  }
  0x47   :  { %943 = vsyncadd [#allocation7], 4294965248 }
  0x48   :  { %944 = dma.done.wait [#allocation10], 1024  }
  0x49   :  { %945 = vsyncadd [#allocation10], 4294966272  ;;  %v954_v0 = vmov 0.0   ;;  %vm955_vm0 = vmmov 0   ;;  %v956_v1 = vmov 0   ;;  %v795_v2 = vld [vmem:[#allocation3] sm:$0xff]  }
  0x4a   :  { %703 = vmatprep.subr.bf16.mxu0 %v954_v0  ;;  %723 = vmatprep.subr.bf16.mxu1 %v954_v0  ;;  %v796_v3 = vld [vmem:[#allocation6] sm:$0xff]   ;;  %v797_v4 = vld [vmem:[#allocation3 + $0x8] sm:$0xff]   ;;  %v799_v6 = vld [vmem:[#allocation3 + $0x10] sm:$0xff]   ;;  %s957_s12 = smov [#allocation11]  }
  0x4b   :  { %719 = vmatprep.mubr.msk.bf16.mxu0 %vm955_vm0, %v954_v0  ;;  %739 = vmatprep.mubr.msk.bf16.mxu1 %vm955_vm0, %v954_v0  ;;  %v798_v5 = vld [vmem:[#allocation6 + $0x8] sm:$0xff]   ;;  %v800_v7 = vld [vmem:[#allocation6 + $0x10] sm:$0xff]   ;;  %v801_v8 = vld [vmem:[#allocation3 + $0x18] sm:$0xff]   ;;  %s608_s13 = sshll.u32 %s957_s12, 4  ;;  %s609_s13 = int_to_ptr.vmem [resolvable:$true] %s608_s13 }
  0x4c   :  { %794 = vset.pattern.permute.xlu1 %v956_v1  ;;  %793 = vset.pattern.permute.xlu0 %v956_v1  ;;  %v802_v9 = vld [vmem:[#allocation6 + $0x18] sm:$0xff]   ;;  %v803_v10 = vld [vmem:[#allocation3 + $0x20] sm:$0xff]   ;;  %v805_v12 = vld [vmem:[#allocation3 + $0x28] sm:$0xff]   ;;  %s918_s15 = scalar_lea.vmem %s609_s13, 128  ;;  %p923_p5 = scmp.lt.s32.totalorder %s609_s13, %s609_s13 }
  0x4d   :  { %704 = vmatpush3.bf16.msra.mxu0 %v795_v2  ;;  %724 = vmatpush3.bf16.msra.mxu1 %v796_v3  ;;  %v804_v11 = vld [vmem:[#allocation6 + $0x20] sm:$0xff]   ;;  %v806_v15 = vld [vmem:[#allocation6 + $0x28] sm:$0xff]   ;;  %v807_v16 = vld [vmem:[#allocation3 + $0x30] sm:$0xff]   ;;  %p919_p4 = scmp.ne.s32.totalorder %s609_s13, %s918_s15  ;;  %p924_p6 = scmp.lt.s32.totalorder %s918_s15, %s918_s15 }
  0x4e   :  { %705 = vmatprep.subr.bf16.mxu0 %v954_v0  ;;  %725 = vmatprep.subr.bf16.mxu1 %v954_v0  ;;  %v340_v13 = vld [vmem:[%s1175_s9] sm:$0xff]  ;;  %v341_v17 = vld [vmem:[%s1175_s9 + $0x8] sm:$0xff]  ;;  %v808_v19 = vld [vmem:[#allocation6 + $0x30] sm:$0xff]  }
  0x4f   :  { %v326_v14 = vld [vmem:[%s1174_s8] sm:$0xff]  ;;  %344 = vperm.xlu1 %794, %v340_v13   ;;  %v327_v18 = vld [vmem:[%s1174_s8 + $0x8] sm:$0xff]  ;;  %v809_v20 = vld [vmem:[#allocation3 + $0x38] sm:$0xff]   ;;  %p925_p7 = por %p924_p6, %p923_p5 }
  0x50   :  { %330 = vperm.xlu0 %793, %v326_v14   ;;  %v810_v21 = vld [vmem:[#allocation6 + $0x38] sm:$0xff]   ;;  %v811_v22 = vld [vmem:[%s1166_s0] sm:$0xff]   ;;  %v815_v26 = vld [vmem:[#allocation9 + $0x8] sm:$0xff]  }
  0x51   :  { %706 = vmatpush3.bf16.msra.mxu0 %v797_v4  ;;  %726 = vmatpush3.bf16.msra.mxu1 %v798_v5  ;;  %v812_v23 = vld [vmem:[%s1168_s2] sm:$0xff]   ;;  %v816_v27 = vld [vmem:[#allocation8 + $0x8] sm:$0xff]   ;;  %v817_v28 = vld [vmem:[#allocation9 + $0x10] sm:$0xff]   ;;  %p926_p8 = pnand %p925_p7, %p919_p4 }
  0x52   :  { %707 = vmatprep.subr.bf16.mxu0 %v954_v0  ;;  %727 = vmatprep.subr.bf16.mxu1 %v954_v0  ;;  %v813_v24 = vld [vmem:[#allocation9] sm:$0xff]   ;;  %v818_v29 = vld [vmem:[#allocation8 + $0x10] sm:$0xff]   ;;  %v819_v30 = vld [vmem:[#allocation9 + $0x18] sm:$0xff]  }
  0x53   :  { %349 = vperm.xlu1 %794, %v341_v17   ;;  %v814_v25 = vld [vmem:[#allocation8] sm:$0xff]   ;;  %v820_v31 = vld [vmem:[#allocation8 + $0x18] sm:$0xff]   ;;  %v823_v34 = vld [vmem:[#allocation9 + $0x28] sm:$0xff]  }
  0x54   :  { %335 = vperm.xlu0 %793, %v327_v18   ;;  %v821_v32 = vld [vmem:[#allocation9 + $0x20] sm:$0xff]   ;;  %v824_v35 = vld [vmem:[#allocation8 + $0x28] sm:$0xff]   ;;  %v825_v36 = vld [vmem:[#allocation9 + $0x30] sm:$0xff]  }
  0x55   :  { %708 = vmatpush3.bf16.msra.mxu0 %v799_v6  ;;  %728 = vmatpush3.bf16.msra.mxu1 %v800_v7  ;;  %v822_v33 = vld [vmem:[#allocation8 + $0x20] sm:$0xff]   ;;  %v826_v37 = vld [vmem:[#allocation8 + $0x30] sm:$0xff]   ;;  %v827_v38 = vld [vmem:[#allocation9 + $0x38] sm:$0xff]  }
  0x56   :  { %709 = vmatprep.subr.bf16.mxu0 %v954_v0  ;;  %729 = vmatprep.subr.bf16.mxu1 %v954_v0  ;;  %v828_v39 = vld [vmem:[%s1170_s4] sm:$0xff]   ;;  %v829_v40 = vld [vmem:[#allocation8 + $0x38] sm:$0xff]  }
  0x57   :  { %v657_v3 = vld [vmem:[%s1173_s7] ss:$0 sm:$0xff] }
  0x59   :  { %710 = vmatpush3.bf16.msra.mxu0 %v801_v8  ;;  %730 = vmatpush3.bf16.msra.mxu1 %v802_v9 }
  0x5a   :  { %711 = vmatprep.subr.bf16.mxu0 %v954_v0  ;;  %731 = vmatprep.subr.bf16.mxu1 %v954_v0 }
  0x5d   :  { %712 = vmatpush3.bf16.msra.mxu0 %v803_v10  ;;  %732 = vmatpush3.bf16.msra.mxu1 %v804_v11 }
  0x5e   :  { %713 = vmatprep.subr.bf16.mxu0 %v954_v0  ;;  %733 = vmatprep.subr.bf16.mxu1 %v954_v0 }
  0x61   :  { %714 = vmatpush3.bf16.msra.mxu0 %v805_v12  ;;  %734 = vmatpush3.bf16.msra.mxu1 %v806_v15 }
  0x62   :  { %715 = vmatprep.subr.bf16.mxu0 %v954_v0  ;;  %735 = vmatprep.subr.bf16.mxu1 %v954_v0 }
  0x65   :  { %716 = vmatpush3.bf16.msra.mxu0 %v807_v16  ;;  %736 = vmatpush3.bf16.msra.mxu1 %v808_v19 }
  0x66   :  { %717 = vmatprep.subr.bf16.mxu0 %v954_v0  ;;  %737 = vmatprep.subr.bf16.mxu1 %v954_v0 }
  0x69   :  { %718 = vmatpush3.bf16.msra.mxu0 %v809_v20  ;;  %738 = vmatpush3.bf16.msra.mxu1 %v810_v21 }
  0x6a   :  { %743 = vmatprep.subr.bf16.mxu0 %v954_v0  ;;  %763 = vmatprep.subr.bf16.mxu1 %v954_v0 }
  0x6c   :  { %720 = vmatmul.mubr.bf16.vlgmr.msra.gmra.mrb[0].mxu0 %v811_v22  ;;  %740 = vmatmul.mubr.bf16.vlgmr.msra.gmra.mrb[0].mxu1 %v812_v23 }
  0x6d   :  { %744 = vmatpush3.bf16.msra.mxu0 %v813_v24  ;;  %764 = vmatpush3.bf16.msra.mxu1 %v814_v25 }
  0x6e   :  { %745 = vmatprep.subr.bf16.mxu0 %v954_v0  ;;  %765 = vmatprep.subr.bf16.mxu1 %v954_v0 }
  0x6f   :  { %759 = vmatprep.mubr.msk.bf16.mxu0 %vm955_vm0, %v954_v0  ;;  %779 = vmatprep.mubr.msk.bf16.mxu1 %vm955_vm0, %v954_v0 }
  0x71   :  { %746 = vmatpush3.bf16.msra.mxu0 %v815_v26  ;;  %766 = vmatpush3.bf16.msra.mxu1 %v816_v27 }
  0x72   :  { %747 = vmatprep.subr.bf16.mxu0 %v954_v0  ;;  %767 = vmatprep.subr.bf16.mxu1 %v954_v0 }
  0x75   :  { %748 = vmatpush3.bf16.msra.mxu0 %v817_v28  ;;  %768 = vmatpush3.bf16.msra.mxu1 %v818_v29 }
  0x76   :  { %749 = vmatprep.subr.bf16.mxu0 %v954_v0  ;;  %769 = vmatprep.subr.bf16.mxu1 %v954_v0 }
  0x79   :  { %750 = vmatpush3.bf16.msra.mxu0 %v819_v30  ;;  %770 = vmatpush3.bf16.msra.mxu1 %v820_v31 }
  0x7a   :  { %751 = vmatprep.subr.bf16.mxu0 %v954_v0  ;;  %771 = vmatprep.subr.bf16.mxu1 %v954_v0 }
  0x7d   :  { %752 = vmatpush3.bf16.msra.mxu0 %v821_v32  ;;  %772 = vmatpush3.bf16.msra.mxu1 %v822_v33 }
  0x7e   :  { %753 = vmatprep.subr.bf16.mxu0 %v954_v0  ;;  %773 = vmatprep.subr.bf16.mxu1 %v954_v0 }
  0x81   :  { %754 = vmatpush3.bf16.msra.mxu0 %v823_v34  ;;  %774 = vmatpush3.bf16.msra.mxu1 %v824_v35 }
  0x82   :  { %755 = vmatprep.subr.bf16.mxu0 %v954_v0  ;;  %775 = vmatprep.subr.bf16.mxu1 %v954_v0 }
  0x85   :  { %756 = vmatpush3.bf16.msra.mxu0 %v825_v36  ;;  %776 = vmatpush3.bf16.msra.mxu1 %v826_v37 }
  0x86   :  { %757 = vmatprep.subr.bf16.mxu0 %v954_v0  ;;  %777 = vmatprep.subr.bf16.mxu1 %v954_v0 }
  0x89   :  { %758 = vmatpush3.bf16.msra.mxu0 %v827_v38  ;;  %778 = vmatpush3.bf16.msra.mxu1 %v829_v40 }
  0x8c   :  { %760 = vmatmul.mubr.bf16.vlgmr.msra.gmra.mrb[4].mxu0 %v828_v39 }
  0xce   :  { %v345_v41 = vpop.permute.xlu1 %344 }
  0xcf   :  { %v331_v42 = vpop.permute.xlu0 %330 }
  0xd2   :  { %v350_v43 = vpop.permute.xlu1 %349 }
  0xd3   :  { %v336_v44 = vpop.permute.xlu0 %335 }
 0x13f   :  { %v204_v45 = vpop.f32.mrb[0].mxu0  ;;  %v317_v47 = vpop.f32.mrb[0].mxu1 }
 0x140   :  { %v338_v46 = vmul.f32 %v331_v42, %v204_v45  ;;  %v721_v48 = vpop.f32.mrb[1].mxu0  ;;  %v352_v49 = vmul.f32 %v345_v41, %v317_v47  ;;  %v741_v50 = vpop.f32.mrb[1].mxu1 }
 0x141   :  { %v207_v51 = vpop.f32.mrb[2].mxu0  ;;  %v320_v53 = vpop.f32.mrb[2].mxu1 }
 0x142   :  { %v339_v52 = vmul.f32 %v336_v44, %v207_v51  ;;  %v722_v54 = vpop.f32.mrb[3].mxu0  ;;  %v354_v55 = vadd.f32 %v352_v49, %v338_v46  ;;  %v353_v56 = vmul.f32 %v350_v43, %v320_v53  ;;  %v742_v57 = vpop.f32.mrb[3].mxu1 }
 0x144   :  { %v355_v58 = vadd.f32 %v353_v56, %v339_v52 }
 0x146   :  { %v365_v59 = vpack.c.bf16 %v355_v58, %v354_v55 }
 0x148   :  { %780 = vmatmul.mubr.bf16.vlgmr.msra.gmra.mrb[4].mxu1 %v365_v59 }
 0x15f   :  { %v488_v60 = vpop.f32.mrb[4].mxu0 }
 0x160   :  { %v761_v61 = vpop.f32.mrb[5].mxu0 }
 0x161   :  { %v491_v62 = vpop.f32.mrb[6].mxu0 }
 0x162   :  { %v762_v63 = vpop.f32.mrb[7].mxu0 }
 0x21b   :  { %v577_v0 = vpop.f32.mrb[4].mxu1 }
 0x21c   :  { %v578_v1 = vadd.f32 %v577_v0, %v488_v60  ;;  %v781_v2 = vpop.f32.mrb[5].mxu1 }
 0x21d   :  { %v580_v4 = vpop.f32.mrb[6].mxu1 }
 0x21e   :  { %v581_v5 = vadd.f32 %v580_v4, %v491_v62  ;;  %v782_v6 = vpop.f32.mrb[7].mxu1  ;;  %v591_v7 = vadd.f32 %v657_v3, %v578_v1 }
 0x220   :  { %v592_v8 = vadd.f32 %v657_v3, %v581_v5 }
 0x222   :  { %v665_v9 = vpack.c.bf16 %v592_v8, %v591_v7 }
 0x224   :  { %666 = vst [vmem:[#allocation11] sm:$0xff] %v665_v9  }
 0x225   :  { %929 = shalt.err (!%p926_p8)
}
 0x226   :  { %s930_s7 = scalar_lea.hbm %s1176_s10, 128 }
 0x227   :  { %p931_p9 = scmp.ne.s32.totalorder %s1176_s10, %s930_s7  ;;  %p934_p10 = scmp.lt.u32.totalorder %s930_s7, %s1176_s10 }
 0x229   :  { %p936_p11 = pnand %p934_p10, %p931_p9 }
 0x22b   :  { %939 = shalt.err (!%p936_p11)
}
 0x22c   :  { %614 = dma.vmem_to_hbm [thread:$0]  %s609_s13, 128, %s1176_s10, [#allocation5], %s950_s25, %s950_s25, %s951_s26  }
 0x22d   :  { %946 = dma.done.wait [#allocation5], 128  }
 0x22e   :  { %947 = vsyncadd [#allocation5], 4294967168 }
 0x22f   :  { %618 = vsyncpa [#allocation4], 1 }
 0x230   :  { %619 = vsyncpa [#allocation7], 1 }
 0x231   :  { %620 = vsyncpa [#allocation10], 1 }
 0x232   :  { %621 = vsyncpa [#allocation5], 1 }

</bundles_post_ra>
